<compile_context>
chip_gen: v7x
topology: tpu7x:2x2x1
jax: 0.10.0
libtpu: 0.0.40
codegen_flags: <defaults>
</compile_context>

<pallas_src>
import functools

import jax
import jax.numpy as jnp
from jax import lax
from jax.experimental import pallas as pl
from jax.experimental.pallas import tpu as pltpu


def _round_up(x, m):
    return (x + m - 1) // m * m


def _conv_s2d_kernel(z_ref, w_ref, b_ref, o_ref, *, tm, shifts):
    """One (image, M-tile) step.

    z_ref: (R_in, C4)   f32  -- per-image space-to-depth slab (resident across M tiles)
    w_ref: (4, C4, Cout) bf16 -- per-shift weight matrices (resident)
    b_ref: (Cout, 1)    f32  -- bias (broadcast over lanes)
    o_ref: (Cout, tm)   f32  -- transposed, lane-dense output tile
    """
    i = pl.program_id(1)
    base = i * tm
    cout = w_ref.shape[-1]

    acc = jnp.zeros((tm, cout), jnp.float32)
    for s, shift in enumerate(shifts):            # static, unrolled (4 taps)
        lhs = z_ref[pl.ds(base + shift, tm), :]   # (tm, C4) f32
        acc = acc + jnp.dot(lhs.astype(jnp.bfloat16), w_ref[s],
                            preferred_element_type=jnp.float32)

    out_t = jnp.transpose(acc) + b_ref[...]       # (Cout, tm), lane-dense store
    o_ref[...] = out_t.astype(o_ref.dtype)


def reflect_conv_forward(x_nchw, weight_oihw, bias_o, *, stride=2, pad=1):
    """Forward of reflect_conv: ReflectionPad2d(pad) -> Conv2d(k=4, stride=2, pad=0)."""
    N, Cin, H, W = x_nchw.shape
    Cout, Cin2, KH, KW = weight_oihw.shape
    assert Cin == Cin2
    # TODO(synk): the space-to-depth tap factorization below is specific to the
    # module defaults kernel_size=4, stride=2; other k/s would need a different
    # (or generic im2col) decomposition.
    assert KH == 4 and KW == 4 and stride == 2, "kernel specialized to k=4, s=2"

    Hp, Wp = H + 2 * pad, W + 2 * pad
    OH = (Hp - KH) // stride + 1
    OW = (Wp - KW) // stride + 1

    # Reflection padding (NCHW, matches nn.ReflectionPad2d: edge not repeated).
    x_p = jnp.pad(x_nchw, ((0, 0), (0, 0), (pad, pad), (pad, pad)), mode="reflect")
    # Even-pad spatial dims so 2x2 space-to-depth is exact; the extra rows/cols
    # only ever feed discarded margin outputs.
    Hp_e, Wp_e = Hp + (Hp % 2), Wp + (Wp % 2)
    if (Hp_e, Wp_e) != (Hp, Wp):
        x_p = jnp.pad(x_p, ((0, 0), (0, 0), (0, Hp_e - Hp), (0, Wp_e - Wp)))
    Hh, Wh = Hp_e // 2, Wp_e // 2
    C4 = 4 * Cin

    # Space-to-depth: z[n, i*Wh + j, (2a+b)*Cin + c] = x_p[n, c, 2i+a, 2j+b].
    z = x_p.reshape(N, Cin, Hh, 2, Wh, 2)
    z = z.transpose(0, 2, 4, 3, 5, 1).reshape(N, Hh * Wh, C4).astype(jnp.float32)

    R = Hh * Wh
    TM = min(512, _round_up(R, 128))        # lane-aligned M tile
    n_inner = (R + TM - 1) // TM
    R_out = n_inner * TM
    R_in = R_out + Wh + 1                   # slack so shifted slices stay in range
    z = jnp.pad(z, ((0, 0), (0, R_in - R), (0, 0)))

    # Per-shift weights: wr[2*dh+dw, (2a+b)*Cin + c, o] = W[o, c, 2*dh+a, 2*dw+b].
    wr = weight_oihw.reshape(Cout, Cin, 2, 2, 2, 2)
    wr = wr.transpose(2, 4, 3, 5, 1, 0).reshape(4, C4, Cout).astype(jnp.bfloat16)
    bias2d = bias_o.reshape(Cout, 1).astype(jnp.float32)

    shifts = tuple(dh * Wh + dw for dh in (0, 1) for dw in (0, 1))

    flops = 2 * N * R_out * C4 * Cout * len(shifts)
    bytes_accessed = (z.size * 4 + wr.size * 2 + bias2d.size * 4
                      + N * Cout * R_out * 4)

    out_t = pl.pallas_call(
        functools.partial(_conv_s2d_kernel, tm=TM, shifts=shifts),
        out_shape=jax.ShapeDtypeStruct((N, Cout, R_out), jnp.float32),
        grid_spec=pltpu.PrefetchScalarGridSpec(
            num_scalar_prefetch=0,
            grid=(N, n_inner),
            in_specs=[
                # Per-image slab; block index only depends on n -> loaded once
                # per image and resident across the inner M-tile axis.
                pl.BlockSpec((None, R_in, C4), lambda n, i: (n, 0, 0)),
                # Weights / bias: tiny, fully resident.
                pl.BlockSpec((4, C4, Cout), lambda n, i: (0, 0, 0)),
                pl.BlockSpec((Cout, 1), lambda n, i: (0, 0)),
            ],
            out_specs=pl.BlockSpec((None, Cout, TM), lambda n, i: (n, 0, i)),
        ),
        compiler_params=pltpu.CompilerParams(
            dimension_semantics=("parallel", "parallel"),
            vmem_limit_bytes=32 * 1024 * 1024,
        ),
        cost_estimate=pl.CostEstimate(
            flops=flops, transcendentals=0, bytes_accessed=bytes_accessed),
    )(z, wr, bias2d)

    # (N, Cout, R_out) -> (N, Cout, OH, OW): already NCHW, just drop margins.
    out = out_t[:, :, :R].reshape(N, Cout, Hh, Wh)[:, :, :OH, :OW]
    return out.astype(x_nchw.dtype)


if __name__ == "__main__":
    # Small deterministic example consistent with the module defaults
    # (kernel_size=4, stride=2, pad=1).
    N, Cin, H, W = 2, 4, 16, 16
    Cout, KH, KW = 8, 4, 4
    stride, pad = 2, 1

    key = jax.random.PRNGKey(0)
    kx, kw_, kb = jax.random.split(key, 3)
    x = jax.random.normal(kx, (N, Cin, H, W), dtype=jnp.float32)

    # Deterministic parameter init mimicking PyTorch Conv2d defaults.
    fan_in = Cin * KH * KW
    bound = 1.0 / (fan_in ** 0.5)
    weight = jax.random.uniform(kw_, (Cout, Cin, KH, KW), jnp.float32,
                                minval=-bound, maxval=bound)
    bias = jax.random.uniform(kb, (Cout,), jnp.float32,
                              minval=-bound, maxval=bound)

    out = reflect_conv_forward(x, weight, bias, stride=stride, pad=pad)
    out = jax.block_until_ready(out)

    # Reference: XLA conv on the same reflect-padded input, with the same bf16
    # rounding of the MXU inputs (f32 accumulation).
    x_pad = jnp.pad(x, ((0, 0), (0, 0), (pad, pad), (pad, pad)), mode="reflect")
    xr = x_pad.astype(jnp.bfloat16).astype(jnp.float32)
    wrf = weight.astype(jnp.bfloat16).astype(jnp.float32)
    ref = lax.conv_general_dilated(xr, wrf, window_strides=(stride, stride),
                                   padding="VALID",
                                   precision=lax.Precision.HIGHEST)
    ref = ref + bias[None, :, None, None]

    expected_shape = (N, Cout, (H + 2 * pad - KH) // stride + 1,
                      (W + 2 * pad - KW) // stride + 1)
    assert out.shape == expected_shape, (out.shape, expected_shape)
    err = float(jnp.max(jnp.abs(out - ref)))
    assert jnp.allclose(out, ref, atol=2e-3, rtol=2e-3), f"mismatch, max err={err}"
    print("KERNEL_OK")
</pallas_src>

<mosaic_0001>
module attributes {stable_mosaic.version = 11 : i64} {
  func.func @_conv_s2d_kernel(%arg0: i32, %arg1: i32, %arg2: memref<1x138x16xf32, #tpu.memory_space<vmem>>, %arg3: memref<4x16x8xbf16, #tpu.memory_space<vmem>>, %arg4: memref<8x1xf32, #tpu.memory_space<vmem>>, %arg5: memref<1x8x128xf32, #tpu.memory_space<vmem>>) attributes {dimension_semantics = [#tpu.dimension_semantics<parallel>, #tpu.dimension_semantics<parallel>], iteration_bounds = array<i64: 2, 1>, scalar_prefetch = 0 : i64, scratch_operands = 0 : i64, tpu.core_type = #tpu.core_type<tc>, window_params = [{transform_indices = @transform_0, window_bounds = array<i64: 1, 138, 16>}, {pipeline_mode = #tpu.pipeline_mode<synchronous>, transform_indices = @transform_1, window_bounds = array<i64: 4, 16, 8>}, {pipeline_mode = #tpu.pipeline_mode<synchronous>, transform_indices = @transform_2, window_bounds = array<i64: 8, 1>}, {transform_indices = @transform_3, window_bounds = array<i64: 1, 8, 128>}]} {
    %c128_i32 = arith.constant 128 : i32
    %0 = arith.muli %arg1, %c128_i32 : i32
    %cst = arith.constant 0.000000e+00 : f32
    %1 = vector.broadcast %cst : f32 to vector<128x8xf32>
    %c0_i32 = arith.constant 0 : i32
    %2 = arith.addi %0, %c0_i32 : i32
    %c0 = arith.constant 0 : index
    %3 = arith.index_cast %2 : i32 to index
    %c0_0 = arith.constant 0 : index
    %4 = vector.load %arg2[%c0, %3, %c0_0] : memref<1x138x16xf32, #tpu.memory_space<vmem>>, vector<1x128x16xf32>
    %5 = vector.shape_cast %4 : vector<1x128x16xf32> to vector<128x16xf32>
    %6 = arith.truncf %5 : vector<128x16xf32> to vector<128x16xbf16>
    %c0_1 = arith.constant 0 : index
    %c0_2 = arith.constant 0 : index
    %c0_3 = arith.constant 0 : index
    %7 = vector.load %arg3[%c0_1, %c0_2, %c0_3] : memref<4x16x8xbf16, #tpu.memory_space<vmem>>, vector<1x16x8xbf16>
    %8 = vector.shape_cast %7 : vector<1x16x8xbf16> to vector<16x8xbf16>
    %cst_4 = arith.constant dense<0.000000e+00> : vector<128x8xf32>
    %9 = tpu.matmul %6, %8, %cst_4 {dimension_numbers = #tpu.dot_dimension_numbers<[1], [0], [0], [1], [0, 0, 1, 1], [], []>} : vector<128x16xbf16>, vector<16x8xbf16>, vector<128x8xf32> -> vector<128x8xf32>
    %10 = arith.addf %1, %9 : vector<128x8xf32>
    %c1_i32 = arith.constant 1 : i32
    %11 = arith.addi %0, %c1_i32 : i32
    %c0_5 = arith.constant 0 : index
    %12 = arith.index_cast %11 : i32 to index
    %c0_6 = arith.constant 0 : index
    %13 = vector.load %arg2[%c0_5, %12, %c0_6] : memref<1x138x16xf32, #tpu.memory_space<vmem>>, vector<1x128x16xf32>
    %14 = vector.shape_cast %13 : vector<1x128x16xf32> to vector<128x16xf32>
    %15 = arith.truncf %14 : vector<128x16xf32> to vector<128x16xbf16>
    %c1 = arith.constant 1 : index
    %c0_7 = arith.constant 0 : index
    %c0_8 = arith.constant 0 : index
    %16 = vector.load %arg3[%c1, %c0_7, %c0_8] : memref<4x16x8xbf16, #tpu.memory_space<vmem>>, vector<1x16x8xbf16>
    %17 = vector.shape_cast %16 : vector<1x16x8xbf16> to vector<16x8xbf16>
    %cst_9 = arith.constant dense<0.000000e+00> : vector<128x8xf32>
    %18 = tpu.matmul %15, %17, %cst_9 {dimension_numbers = #tpu.dot_dimension_numbers<[1], [0], [0], [1], [0, 0, 1, 1], [], []>} : vector<128x16xbf16>, vector<16x8xbf16>, vector<128x8xf32> -> vector<128x8xf32>
    %19 = arith.addf %10, %18 : vector<128x8xf32>
    %c9_i32 = arith.constant 9 : i32
    %20 = arith.addi %0, %c9_i32 : i32
    %c0_10 = arith.constant 0 : index
    %21 = arith.index_cast %20 : i32 to index
    %c0_11 = arith.constant 0 : index
    %22 = vector.load %arg2[%c0_10, %21, %c0_11] : memref<1x138x16xf32, #tpu.memory_space<vmem>>, vector<1x128x16xf32>
    %23 = vector.shape_cast %22 : vector<1x128x16xf32> to vector<128x16xf32>
    %24 = arith.truncf %23 : vector<128x16xf32> to vector<128x16xbf16>
    %c2 = arith.constant 2 : index
    %c0_12 = arith.constant 0 : index
    %c0_13 = arith.constant 0 : index
    %25 = vector.load %arg3[%c2, %c0_12, %c0_13] : memref<4x16x8xbf16, #tpu.memory_space<vmem>>, vector<1x16x8xbf16>
    %26 = vector.shape_cast %25 : vector<1x16x8xbf16> to vector<16x8xbf16>
    %cst_14 = arith.constant dense<0.000000e+00> : vector<128x8xf32>
    %27 = tpu.matmul %24, %26, %cst_14 {dimension_numbers = #tpu.dot_dimension_numbers<[1], [0], [0], [1], [0, 0, 1, 1], [], []>} : vector<128x16xbf16>, vector<16x8xbf16>, vector<128x8xf32> -> vector<128x8xf32>
    %28 = arith.addf %19, %27 : vector<128x8xf32>
    %c10_i32 = arith.constant 10 : i32
    %29 = arith.addi %0, %c10_i32 : i32
    %c0_15 = arith.constant 0 : index
    %30 = arith.index_cast %29 : i32 to index
    %c0_16 = arith.constant 0 : index
    %31 = vector.load %arg2[%c0_15, %30, %c0_16] : memref<1x138x16xf32, #tpu.memory_space<vmem>>, vector<1x128x16xf32>
    %32 = vector.shape_cast %31 : vector<1x128x16xf32> to vector<128x16xf32>
    %33 = arith.truncf %32 : vector<128x16xf32> to vector<128x16xbf16>
    %c3 = arith.constant 3 : index
    %c0_17 = arith.constant 0 : index
    %c0_18 = arith.constant 0 : index
    %34 = vector.load %arg3[%c3, %c0_17, %c0_18] : memref<4x16x8xbf16, #tpu.memory_space<vmem>>, vector<1x16x8xbf16>
    %35 = vector.shape_cast %34 : vector<1x16x8xbf16> to vector<16x8xbf16>
    %cst_19 = arith.constant dense<0.000000e+00> : vector<128x8xf32>
    %36 = tpu.matmul %33, %35, %cst_19 {dimension_numbers = #tpu.dot_dimension_numbers<[1], [0], [0], [1], [0, 0, 1, 1], [], []>} : vector<128x16xbf16>, vector<16x8xbf16>, vector<128x8xf32> -> vector<128x8xf32>
    %37 = arith.addf %28, %36 : vector<128x8xf32>
    %38 = tpu.transpose %37, [1, 0] : vector<128x8xf32> -> vector<8x128xf32>
    %c0_20 = arith.constant 0 : index
    %c0_21 = arith.constant 0 : index
    %39 = vector.load %arg4[%c0_20, %c0_21] : memref<8x1xf32, #tpu.memory_space<vmem>>, vector<8x1xf32>
    %40 = vector.broadcast %39 : vector<8x1xf32> to vector<8x128xf32>
    %41 = arith.addf %38, %40 : vector<8x128xf32>
    %c0_22 = arith.constant 0 : index
    %c0_23 = arith.constant 0 : index
    %c0_24 = arith.constant 0 : index
    %42 = vector.load %arg5[%c0_22, %c0_23, %c0_24] : memref<1x8x128xf32, #tpu.memory_space<vmem>>, vector<1x8x128xf32>
    %43 = vector.shape_cast %42 : vector<1x8x128xf32> to vector<8x128xf32>
    %44 = vector.shape_cast %41 : vector<8x128xf32> to vector<1x8x128xf32>
    tpu.vector_store %arg5[%c0_22, %c0_23, %c0_24], %44 {strides = array<i32>} : memref<1x8x128xf32, #tpu.memory_space<vmem>>, vector<1x8x128xf32>,
    return
  }
  func.func @transform_0(%arg0: i32, %arg1: i32) -> (i32, i32, i32) {
    %c0_i32 = arith.constant 0 : i32
    %c0_i32_0 = arith.constant 0 : i32
    %c0_i32_1 = arith.constant 0 : i32
    return %arg0, %c0_i32, %c0_i32_0 : i32, i32, i32
  }
  func.func @transform_1(%arg0: i32, %arg1: i32) -> (i32, i32, i32) {
    %c0_i32 = arith.constant 0 : i32
    %c0_i32_0 = arith.constant 0 : i32
    %c0_i32_1 = arith.constant 0 : i32
    %c0_i32_2 = arith.constant 0 : i32
    return %c0_i32, %c0_i32_0, %c0_i32_1 : i32, i32, i32
  }
  func.func @transform_2(%arg0: i32, %arg1: i32) -> (i32, i32) {
    %c0_i32 = arith.constant 0 : i32
    %c0_i32_0 = arith.constant 0 : i32
    %c0_i32_1 = arith.constant 0 : i32
    return %c0_i32, %c0_i32_0 : i32, i32
  }
  func.func @transform_3(%arg0: i32, %arg1: i32) -> (i32, i32, i32) {
    %c0_i32 = arith.constant 0 : i32
    %c0_i32_0 = arith.constant 0 : i32
    return %arg0, %c0_i32, %arg1 : i32, i32, i32
  }
}

</mosaic_0001>

<bundles_post_ra>
// kernel: tpu_custom_call.1
= control target key start
LH: loop header
LB: loop body
LE: loop exit
PB: predicated region body
PF: predicated region fallthrough
CT: control target
= control target key end

     0   :  { %8 = vsyncpa [#allocation3], 0  ;;  %s1605_s0 = inlined_call_operand.vmem [shape: f32[2,138,16], index: 0, kind: input, shape index: {}]   ;;  %s1606_s1 = inlined_call_operand.vmem [shape: bf16[4,16,8], index: 1, kind: input, shape index: {}]   ;;  %s1607_s2 = inlined_call_operand.vmem [shape: f32[8,1], index: 2, kind: input, shape index: {}]   ;;  %s1608_s3 = inlined_call_operand.hbm [shape: f32[2,8,128], index: 3, kind: output, shape index: {}]  }
   0x1   :  { %10 = vsyncpa [#allocation3 + $0x1], 0  ;;  %s1395_s12 = smov 0   ;;  %s1397_s13 = smov 0  }
   0x2   :  { %s1399_s14 = smov 0   ;;  %s1401_s15 = smov 0  }
   0x3   :  { %s1403_s16 = smov 0   ;;  %s1405_s17 = smov 0  }
   0x4 LB: > { %s974_s18 = sadd.s32 4294967295, %s1371_s17   ;;  %s975_s19 = sadd.s32 4294967294, %s1371_s17   ;;  %s1371_s17 = sphi %s1405_s17, %s16_s17   ;;  %s1367_s16 = sphi %s1403_s16, %s1615_s16   ;;  %s1363_s15 = sphi %s1401_s15, %s1614_s15   ;;  %s1359_s14 = sphi %s1399_s14, %s1613_s14   ;;  %s1355_s13 = sphi %s1397_s13, %s1612_s13   ;;  %s1351_s12 = sphi %s1395_s12, %s1611_s12  }
   0x5   : > { %s28_s20 = sadd.s32 1, %s1367_s16  ;;  %s105_s21 = sadd.s32 1, %s1359_s14 }
   0x6   : > { %p30_p0 = scmp.ge.s32.totalorder %s28_s20, 2  ;;  %p115_p1 = scmp.ne.s32.totalorder %s1359_s14, %s1355_s13 }
   0x7   : > { %p116_p2 = scmp.eq.s32.totalorder %s974_s18, 1  ;;  %p121_p3 = scmp.ne.s32.totalorder %s1355_s13, %s1351_s12 }
   0x8   : > { %s1617_s20 = smov (%p30_p0, %s28_s20), 0  ;;  %p122_p5 = scmp.eq.s32.totalorder %s975_s19, 1 }
   0x9   : > { %p1435_p4 = por %p116_p2, %p115_p1  ;;  %s100_s23 = ssub.s32 %s1367_s16, %s1617_s20 }
   0xa   : > { %p978_p6 = scmp.ge.s32.totalorder %s1371_s17, 1  ;;  %p103_p7 = scmp.eq.s32.totalorder %s100_s23, 0 }
   0xb   : > { %p1442_p8 = por %p122_p5, %p121_p3  ;;  %p154_p9 = scmp.lt.s32.totalorder %s1371_s17, 3 }
   0xc   : > { %s1448_s25 = scalar_select %p103_p7, %s1359_s14, %s105_s21  }
   0xd   : > { %p155_p10 = pnand %p978_p6, %p154_p9 }
   0xe   : > { %v1289_v0 = vld [vmem:[%s1606_s1 + $0x8] sm:$0xff] (!%p155_p10)   ;;  %p178_p11 = scmp.lt.s32.totalorder (!%p155_p10), %s1363_s15, 1  ;;  %v1290_v1 = vld [vmem:[%s1606_s1 + $0x10] sm:$0xff] (!%p155_p10)   ;;  %v1291_v2 = vld [vmem:[%s1606_s1] sm:$0xff] (!%p155_p10)   ;;  %v1373_v5 = vmov (!%p155_p10), 0   ;;  %vm247_vm0 = vcmask (!%p155_p10), 130048  }
   0xf   : > { %158 = sbr.rel (%p155_p10) target bundleno = 423 (0x1a7), region = 32  ;;  %1111 = vmatprep.subr.bf16.mxu1 (!%p155_p10), %v1289_v0  ;;  %1147 = vmatprep.subr.bf16.mxu0 (!%p155_p10), %v1290_v1  ;;  %v1292_v3 = vld [vmem:[%s1606_s1 + $0x18] sm:$0xff] (!%p155_p10)   ;;  %v872_v4 = vld [vmem:[%s1607_s2] sm:$0xff] (!%p155_p10)  ;;  %s175_s21 = sand.u32 (!%p155_p10), 1, %s1355_s13  }
  0x10   : > { %1112 = vmatpush3.bf16.msra.mxu1 (!%p155_p10), %v1289_v0  ;;  %1148 = vmatpush3.bf16.msra.mxu0 (!%p155_p10), %v1290_v1  ;;  %s979_s23 = sshll.u32 (!%p155_p10), %s175_s21, 3  ;;  %s1072_s26 = sshll.u32 (!%p155_p10), %s1363_s15, 7 }
  0x11   : > { %1129 = vmatprep.subr.bf16.mxu1 (!%p155_p10), %v1291_v2  ;;  %1165 = vmatprep.subr.bf16.mxu0 (!%p155_p10), %v1292_v3  ;;  %s177_s27 = scalar_lea.vmem (!%p155_p10), [#allocation2], %s979_s23  ;;  %s1558_s4 = scalar_lea.hbm (!%p155_p10), %s1608_s3, %s1072_s26 }
  0x12   : > { %1288 = vset.pattern.permute.xlu0 (!%p155_p10), %v1373_v5  ;;  %s895_s28 = sshll.u32 (!%p155_p10), %s177_s27, 4  ;;  %s881_s5 = scalar_lea.sflag (!%p155_p10), [#allocation3], %s175_s21  ;;  %s1560_s28 = int_to_ptr.vmem [resolvable:$true] %s895_s28 }
  0x13   : > { %875 = vperm.xlu0 (!%p155_p10), %1288, %v872_v4   ;;  %s1293_s6 = scalar_lea.vmem (!%p155_p10), %s1560_s28, 128 }
  0x14   : > { %p1294_p12 = scmp.ne.s32.totalorder (!%p155_p10), %s1560_s28, %s1293_s6 }
  0x16   : > { %s179_s30 = scalar_select %p178_p11, %s1363_s15, 1 }
  0x17   : > { %p1295_p13 = pnand %p1294_p12, %p1435_p4  ;;  %s1374_s15 = smov [#allocation2]  }
  0x18   : > { %s1231_s8 = smul.u32 144, %s179_s30  ;;  %s1297_s7 = sshll.u32 %s1374_s15, 4  ;;  %s1298_s7 = int_to_ptr.vmem [resolvable:$false] %s1297_s7 }
  0x19   : > { %p1296_p0 = pneg %p1295_p13  ;;  %p1300_p1 = scmp.lt.s32.totalorder %s1560_s28, %s1298_s7 }
  0x1a   : > { %s1470_s19 = scalar_lea.vmem %s1605_s0, %s1231_s8  ;;  %s1299_s8 = scalar_lea.vmem %s1298_s7, 256 }
  0x1b   : > { %v981_v6 = vld [vmem:[%s1470_s19 + $0x1] sm:$0xff]  ;;  %v982_v7 = vld [vmem:[%s1470_s19 + $0x9] sm:$0xff]  ;;  %v1018_v8 = vld [vmem:[%s1470_s19 + $0x11] sm:$0xff]  ;;  %p1301_p2 = scmp.lt.s32.totalorder %s1299_s8, %s1293_s6 }
  0x1c   : > { %v230_v9 = vpack.c.bf16 %v982_v7, %v981_v6  ;;  %v514_v10 = vpack.c.bf16 %v1018_v8, %v982_v7  ;;  %v984_v11 = vld [vmem:[%s1470_s19 + $0x19] sm:$0xff]  ;;  %v1020_v12 = vld [vmem:[%s1470_s19 + $0x21] sm:$0xff]  ;;  %v986_v13 = vld [vmem:[%s1470_s19 + $0x29] sm:$0xff] }
  0x1d   : > { %v231_v14 = vpack.c.bf16 %v984_v11, %v1018_v8  ;;  %v515_v15 = vpack.c.bf16 %v1020_v12, %v984_v11  ;;  %v232_v16 = vpack.c.bf16 %v986_v13, %v1020_v12  ;;  %v1022_v17 = vld [vmem:[%s1470_s19 + $0x31] sm:$0xff]  ;;  %v988_v19 = vld [vmem:[%s1470_s19 + $0x39] sm:$0xff]  ;;  %v1024_v20 = vld [vmem:[%s1470_s19 + $0x41] sm:$0xff]  ;;  %p1302_p3 = por %p1301_p2, %p1300_p1 }
  0x1e   : > { %1113 = vmatprep.mubr.msk.bf16.mxu1 %vm247_vm0, %v230_v9  ;;  %1149 = vmatprep.mubr.msk.bf16.mxu0 %vm247_vm0, %v514_v10  ;;  %v516_v18 = vpack.c.bf16 %v1022_v17, %v986_v13  ;;  %v990_v21 = vld [vmem:[%s1470_s19 + $0x49] sm:$0xff]  ;;  %v1026_v22 = vld [vmem:[%s1470_s19 + $0x51] sm:$0xff]  ;;  %v233_v23 = vpack.c.bf16 %v988_v19, %v1022_v17  ;;  %v517_v24 = vpack.c.bf16 %v1024_v20, %v988_v19  ;;  %v992_v27 = vld [vmem:[%s1470_s19 + $0x59] sm:$0xff] }
  0x1f   : > { %1114 = vmatmul.mubr.msk.bf16.vlgmr.msra.gmra.mrb[0].mxu1 %vm247_vm0, %v231_v14  ;;  %1150 = vmatmul.mubr.msk.bf16.vlgmr.msra.gmra.mrb[0].mxu0 %vm247_vm0, %v515_v15  ;;  %v234_v25 = vpack.c.bf16 %v990_v21, %v1024_v20  ;;  %v518_v26 = vpack.c.bf16 %v1026_v22, %v990_v21  ;;  %v1028_v28 = vld [vmem:[%s1470_s19 + $0x61] sm:$0xff]  ;;  %v994_v29 = vld [vmem:[%s1470_s19 + $0x69] sm:$0xff]  ;;  %v1030_v30 = vld [vmem:[%s1470_s19 + $0x71] sm:$0xff]  ;;  %v235_v31 = vpack.c.bf16 %v992_v27, %v1026_v22  ;;  %p1303_p5 = pnand %p1302_p3, %p1296_p0 }
  0x20   : > { %1130 = vmatpush3.bf16.msra.mxu1 %v1291_v2  ;;  %1166 = vmatpush3.bf16.msra.mxu0 %v1292_v3  ;;  %v519_v32 = vpack.c.bf16 %v1028_v28, %v992_v27  ;;  %v236_v33 = vpack.c.bf16 %v994_v29, %v1028_v28  ;;  %v520_v34 = vpack.c.bf16 %v1030_v30, %v994_v29  ;;  %v996_v35 = vld [vmem:[%s1470_s19 + $0x79] sm:$0xff]  ;;  %v1032_v36 = vld [vmem:[%s1470_s19 + $0x81] sm:$0xff]  ;;  %v1044_v39 = vld [vmem:[%s1470_s19 + $0xa] sm:$0xff] }
  0x21   : > { %1117 = vmatprep.mubr.msk.bf16.mxu1 %vm247_vm0, %v232_v16  ;;  %1153 = vmatprep.mubr.msk.bf16.mxu0 %vm247_vm0, %v516_v18  ;;  %v186_v37 = vld [vmem:[%s1470_s19] sm:$0xff]  ;;  %v187_v38 = vld [vmem:[%s1470_s19 + $0x8] sm:$0xff]  ;;  %v1045_v40 = vld [vmem:[%s1470_s19 + $0x12] sm:$0xff]  ;;  %v237_v41 = vpack.c.bf16 %v996_v35, %v1030_v30  ;;  %v521_v42 = vpack.c.bf16 %v1032_v36, %v996_v35 }
  0x22   : > { %v202_v43 = vpack.c.bf16 %v187_v38, %v186_v37  ;;  %v686_v44 = vpack.c.bf16 %v1045_v40, %v1044_v39  ;;  %v188_v45 = vld [vmem:[%s1470_s19 + $0x10] sm:$0xff]  ;;  %v189_v46 = vld [vmem:[%s1470_s19 + $0x18] sm:$0xff]  ;;  %v1047_v48 = vld [vmem:[%s1470_s19 + $0x22] sm:$0xff] }
  0x23   : > { %v1046_v47 = vld [vmem:[%s1470_s19 + $0x1a] sm:$0xff]  ;;  %v191_v50 = vld [vmem:[%s1470_s19 + $0x28] sm:$0xff]  ;;  %v1049_v52 = vld [vmem:[%s1470_s19 + $0x32] sm:$0xff]  ;;  %v203_v53 = vpack.c.bf16 %v189_v46, %v188_v45 }
  0x24   : > { %v190_v49 = vld [vmem:[%s1470_s19 + $0x20] sm:$0xff]  ;;  %v1048_v51 = vld [vmem:[%s1470_s19 + $0x2a] sm:$0xff]  ;;  %v687_v54 = vpack.c.bf16 %v1047_v48, %v1046_v47  ;;  %v193_v58 = vld [vmem:[%s1470_s19 + $0x38] sm:$0xff] }
  0x25   : > { %v204_v55 = vpack.c.bf16 %v191_v50, %v190_v49  ;;  %v688_v56 = vpack.c.bf16 %v1049_v52, %v1048_v51  ;;  %v192_v57 = vld [vmem:[%s1470_s19 + $0x30] sm:$0xff]  ;;  %v1050_v59 = vld [vmem:[%s1470_s19 + $0x3a] sm:$0xff]  ;;  %v1051_v60 = vld [vmem:[%s1470_s19 + $0x42] sm:$0xff] }
  0x26   : > { %v194_v61 = vld [vmem:[%s1470_s19 + $0x40] sm:$0xff]  ;;  %v195_v62 = vld [vmem:[%s1470_s19 + $0x48] sm:$0xff]  ;;  %v1053_v0 = vld [vmem:[%s1470_s19 + $0x52] sm:$0xff]  ;;  %v205_v1 = vpack.c.bf16 %v193_v58, %v192_v57  ;;  %v689_v2 = vpack.c.bf16 %v1051_v60, %v1050_v59 }
  0x27   : > { %1118 = vmatmul.mubr.msk.bf16.gmra.mrb[4].mxu1 %vm247_vm0, %v233_v23  ;;  %1154 = vmatmul.mubr.msk.bf16.gmra.mrb[4].mxu0 %vm247_vm0, %v517_v24  ;;  %v1052_v63 = vld [vmem:[%s1470_s19 + $0x4a] sm:$0xff]  ;;  %v206_v3 = vpack.c.bf16 %v195_v62, %v194_v61  ;;  %v197_v6 = vld [vmem:[%s1470_s19 + $0x58] sm:$0xff]  ;;  %v1055_v8 = vld [vmem:[%s1470_s19 + $0x62] sm:$0xff] }
  0x28   : > { %1121 = vmatprep.mubr.msk.bf16.mxu1 %vm247_vm0, %v234_v25  ;;  %1157 = vmatprep.mubr.msk.bf16.mxu0 %vm247_vm0, %v518_v26  ;;  %v690_v4 = vpack.c.bf16 %v1053_v0, %v1052_v63  ;;  %v196_v5 = vld [vmem:[%s1470_s19 + $0x50] sm:$0xff]  ;;  %v1054_v7 = vld [vmem:[%s1470_s19 + $0x5a] sm:$0xff]  ;;  %v199_v10 = vld [vmem:[%s1470_s19 + $0x68] sm:$0xff] }
  0x29   : > { %v198_v9 = vld [vmem:[%s1470_s19 + $0x60] sm:$0xff]  ;;  %v1056_v11 = vld [vmem:[%s1470_s19 + $0x6a] sm:$0xff]  ;;  %v1057_v12 = vld [vmem:[%s1470_s19 + $0x72] sm:$0xff]  ;;  %v207_v13 = vpack.c.bf16 %v197_v6, %v196_v5  ;;  %v691_v14 = vpack.c.bf16 %v1055_v8, %v1054_v7 }
  0x2a   : > { %v208_v15 = vpack.c.bf16 %v199_v10, %v198_v9  ;;  %v692_v16 = vpack.c.bf16 %v1057_v12, %v1056_v11  ;;  %v200_v17 = vld [vmem:[%s1470_s19 + $0x70] sm:$0xff]  ;;  %v201_v18 = vld [vmem:[%s1470_s19 + $0x78] sm:$0xff]  ;;  %v1059_v20 = vld [vmem:[%s1470_s19 + $0x82] sm:$0xff] }
  0x2b   : > { %v1058_v19 = vld [vmem:[%s1470_s19 + $0x7a] sm:$0xff]  ;;  %v209_v21 = vpack.c.bf16 %v201_v18, %v200_v17 }
  0x2c   : > { %v693_v22 = vpack.c.bf16 %v1059_v20, %v1058_v19 }
  0x2f   : > { %1122 = vmatmul.mubr.msk.bf16.gmra.mrb[8].mxu1 %vm247_vm0, %v235_v31  ;;  %1158 = vmatmul.mubr.msk.bf16.gmra.mrb[8].mxu0 %vm247_vm0, %v519_v32 }
  0x30   : > { %1125 = vmatprep.mubr.msk.bf16.mxu1 %vm247_vm0, %v236_v33  ;;  %1161 = vmatprep.mubr.msk.bf16.mxu0 %vm247_vm0, %v520_v34 }
  0x37   : > { %1126 = vmatmul.mubr.msk.bf16.gmra.mrb[12].mxu1 %vm247_vm0, %v237_v41  ;;  %1162 = vmatmul.mubr.msk.bf16.gmra.mrb[12].mxu0 %vm247_vm0, %v521_v42 }
  0x38   : > { %1131 = vmatprep.mubr.msk.bf16.mxu1 %vm247_vm0, %v202_v43  ;;  %1167 = vmatprep.mubr.msk.bf16.mxu0 %vm247_vm0, %v686_v44 }
  0x3f   : > { %1132 = vmatmul.mubr.msk.bf16.vlgmr.msra.gmra.mrb[0].mxu1 %vm247_vm0, %v203_v53  ;;  %1168 = vmatmul.mubr.msk.bf16.vlgmr.msra.gmra.mrb[0].mxu0 %vm247_vm0, %v687_v54 }
  0x40   : > { %1135 = vmatprep.mubr.msk.bf16.mxu1 %vm247_vm0, %v204_v55  ;;  %1171 = vmatprep.mubr.msk.bf16.mxu0 %vm247_vm0, %v688_v56 }
  0x47   : > { %1136 = vmatmul.mubr.msk.bf16.gmra.mrb[4].mxu1 %vm247_vm0, %v205_v1  ;;  %1172 = vmatmul.mubr.msk.bf16.gmra.mrb[4].mxu0 %vm247_vm0, %v689_v2 }
  0x48   : > { %1139 = vmatprep.mubr.msk.bf16.mxu1 %vm247_vm0, %v206_v3  ;;  %1175 = vmatprep.mubr.msk.bf16.mxu0 %vm247_vm0, %v690_v4 }
  0x4f   : > { %1140 = vmatmul.mubr.msk.bf16.gmra.mrb[8].mxu1 %vm247_vm0, %v207_v13  ;;  %1176 = vmatmul.mubr.msk.bf16.gmra.mrb[8].mxu0 %vm247_vm0, %v691_v14 }
  0x50   : > { %1143 = vmatprep.mubr.msk.bf16.mxu1 %vm247_vm0, %v208_v15  ;;  %1179 = vmatprep.mubr.msk.bf16.mxu0 %vm247_vm0, %v692_v16 }
  0x57   : > { %1144 = vmatmul.mubr.msk.bf16.gmra.mrb[12].mxu1 %vm247_vm0, %v209_v21  ;;  %1180 = vmatmul.mubr.msk.bf16.gmra.mrb[12].mxu0 %vm247_vm0, %v693_v22 }
  0x92   : > { %v876_v7 = vpop.permute.xlu0 %875 }
 0x112   : > { %v1133_v23 = vpop.f32.mrb[0].mxu1  ;;  %v1169_v24 = vpop.f32.mrb[0].mxu0 }
 0x113   : > { %v1183_v25 = vadd.f32 %v1169_v24, %v1133_v23  ;;  %v433_v26 = vpop.f32.mrb[1].mxu1  ;;  %v761_v27 = vpop.f32.mrb[1].mxu0 }
 0x114   : > { %v1184_v28 = vadd.f32 %v761_v27, %v433_v26  ;;  %v1134_v29 = vpop.f32.mrb[2].mxu1  ;;  %v1170_v30 = vpop.f32.mrb[2].mxu0 }
 0x115   : > { %v1185_v31 = vadd.f32 %v1170_v30, %v1134_v29  ;;  %v436_v32 = vpop.f32.mrb[3].mxu1  ;;  %v764_v33 = vpop.f32.mrb[3].mxu0 }
 0x116   : > { %v1186_v34 = vadd.f32 %v764_v33, %v436_v32  ;;  %840 = vxpose.xlu0.b32.start [1/16] (narrow) %v1184_v28, 8 }
 0x11a   : > { %v1173_v35 = vpop.f32.mrb[4].mxu0  ;;  %841 = vxpose.xlu0.b32.cont [2/16] (narrow) %v1186_v34, 8  ;;  %v1137_v36 = vpop.f32.mrb[4].mxu1 }
 0x11b   : > { %v1187_v37 = vadd.f32 %v1173_v35, %v1137_v36  ;;  %v449_v38 = vpop.f32.mrb[5].mxu1  ;;  %v777_v39 = vpop.f32.mrb[5].mxu0 }
 0x11c   : > { %v1188_v40 = vadd.f32 %v777_v39, %v449_v38  ;;  %v1138_v41 = vpop.f32.mrb[6].mxu1  ;;  %v1174_v42 = vpop.f32.mrb[6].mxu0 }
 0x11d   : > { %v1189_v43 = vadd.f32 %v1174_v42, %v1138_v41  ;;  %v452_v44 = vpop.f32.mrb[7].mxu1  ;;  %v780_v45 = vpop.f32.mrb[7].mxu0 }
 0x11e   : > { %v1190_v46 = vadd.f32 %v780_v45, %v452_v44  ;;  %842 = vxpose.xlu0.b32.cont [3/16] (narrow) %v1183_v25, 8 }
 0x122   : > { %v1177_v47 = vpop.f32.mrb[8].mxu0  ;;  %843 = vxpose.xlu0.b32.cont [4/16] (narrow) %v1185_v31, 8  ;;  %v1141_v48 = vpop.f32.mrb[8].mxu1 }
 0x123   : > { %v1191_v49 = vadd.f32 %v1177_v47, %v1141_v48  ;;  %v465_v50 = vpop.f32.mrb[9].mxu1  ;;  %v793_v51 = vpop.f32.mrb[9].mxu0 }
 0x124   : > { %v1192_v52 = vadd.f32 %v793_v51, %v465_v50  ;;  %v1142_v53 = vpop.f32.mrb[10].mxu1  ;;  %v1178_v54 = vpop.f32.mrb[10].mxu0 }
 0x125   : > { %v1193_v55 = vadd.f32 %v1178_v54, %v1142_v53  ;;  %v468_v56 = vpop.f32.mrb[11].mxu1  ;;  %v796_v57 = vpop.f32.mrb[11].mxu0 }
 0x126   : > { %v1194_v58 = vadd.f32 %v796_v57, %v468_v56  ;;  %844 = vxpose.xlu0.b32.cont [5/16] (narrow) %v1188_v40, 8 }
 0x12a   : > { %v1181_v59 = vpop.f32.mrb[12].mxu0  ;;  %845 = vxpose.xlu0.b32.cont [6/16] (narrow) %v1190_v46, 8  ;;  %v1145_v60 = vpop.f32.mrb[12].mxu1 }
 0x12b   : > { %v1195_v61 = vadd.f32 %v1181_v59, %v1145_v60  ;;  %v481_v62 = vpop.f32.mrb[13].mxu1  ;;  %v809_v63 = vpop.f32.mrb[13].mxu0 }
 0x12c   : > { %v1196_v0 = vadd.f32 %v809_v63, %v481_v62  ;;  %v1146_v1 = vpop.f32.mrb[14].mxu1  ;;  %v1182_v2 = vpop.f32.mrb[14].mxu0 }
 0x12d   : > { %v1197_v3 = vadd.f32 %v1182_v2, %v1146_v1  ;;  %v484_v4 = vpop.f32.mrb[15].mxu1  ;;  %v812_v5 = vpop.f32.mrb[15].mxu0 }
 0x12e   : > { %v1198_v6 = vadd.f32 %v812_v5, %v484_v4  ;;  %846 = vxpose.xlu0.b32.cont [7/16] (narrow) %v1187_v37, 8 }
 0x132   : > { %847 = vxpose.xlu0.b32.cont [8/16] (narrow) %v1189_v43, 8 }
 0x136   : > { %848 = vxpose.xlu0.b32.cont [9/16] (narrow) %v1192_v52, 8 }
 0x13a   : > { %849 = vxpose.xlu0.b32.cont [10/16] (narrow) %v1194_v58, 8 }
 0x13e   : > { %850 = vxpose.xlu0.b32.cont [11/16] (narrow) %v1191_v49, 8 }
 0x142   : > { %851 = vxpose.xlu0.b32.cont [12/16] (narrow) %v1193_v55, 8 }
 0x146   : > { %852 = vxpose.xlu0.b32.cont [13/16] (narrow) %v1196_v0, 8 }
 0x14a   : > { %853 = vxpose.xlu0.b32.cont [14/16] (narrow) %v1198_v6, 8 }
 0x14e   : > { %854 = vxpose.xlu0.b32.cont [15/16] (narrow) %v1195_v61, 8 }
 0x152   : > { %855 = vxpose.xlu0.b32.end [16/16] (narrow) %v1197_v3, 8 }
 0x196   : > { %v856_v8 = vpop.trf.xlu0 }
 0x197   : > { %v878_v9 = vadd.f32 %v876_v7, %v856_v8 }
 0x199   : > { %879 = vst [vmem:[%s177_s27] sm:$0xff] %v878_v9 }
 0x19a   : > { %1306 = shalt.err (!%p1303_p5)
}
 0x19b   : > { %s1307_s9 = scalar_lea.hbm %s1558_s4, 128  ;;  %s1311_s18 = scalar_lea.hbm %s1608_s3, 256 }
 0x19c   : > { %p1308_p6 = scmp.ne.s32.totalorder %s1558_s4, %s1307_s9  ;;  %p1312_p10 = scmp.lt.u32.totalorder %s1558_s4, %s1608_s3 }
 0x19d   : > { %p1313_p11 = scmp.lt.u32.totalorder %s1311_s18, %s1307_s9  ;;  %p1315_p13 = scmp.lt.u32.totalorder %s1307_s9, %s1558_s4 }
 0x19e   : > { %p1309_p7 = pnand %p1308_p6, %p1435_p4 }
 0x19f   : > { %p1314_p12 = por %p1313_p11, %p1312_p10 }
 0x1a0   : > { %p1310_p9 = pneg %p1309_p7 }
 0x1a1   : > { %p1316_p0 = por %p1315_p13, %p1314_p12 }
 0x1a3   : > { %p1317_p1 = pnand %p1316_p0, %p1310_p9 }
 0x1a5   : > { %1320 = shalt.err (!%p1317_p1)
}
 0x1a6   : > { %1232 = dma.vmem_to_hbm [thread:$0]  (%p1435_p4), %s1560_s28, 128, %s1558_s4, %s881_s5  }
 0x1a7 PF: > { %p1238_p2 = scmp.ge.s32.totalorder %s1371_s17, 2  ;;  %s907_s23 = sand.u32 1, %s1351_s12  }
 0x1a8   : > { %s908_s26 = scalar_lea.sflag [#allocation3], %s907_s23 }
 0x1a9   : > { %p1235_p3 = pnand %p1238_p2, %p1442_p8 }
 0x1ab   : > { %1346 = dma.done.wait (!%p1235_p3), %s908_s26, 128  }
 0x1ac   : > { %1348 = vsyncadd (!%p1235_p3), %s908_s26, 4294967168  ;;  %s16_s17 = sadd.s32 1, %s1371_s17   ;;  %s1611_s12 = smov %s1355_s13 }
 0x1ad   : > { %p13_p5 = scmp.ge.s32.totalorder %s16_s17, 4   ;;  %s1612_s13 = smov %s1359_s14 }
 0x1ae   : > { %s1613_s14 = smov %s1448_s25  ;;  %s1614_s15 = smov %s1367_s16 }
 0x1af   : > { %s1615_s16 = smov %s1617_s20  ;;  %15 = sbr.rel (!%p13_p5) target bundleno = 4 (0x4), region = 74 }
 0x1b6   :  { %913 = vsyncpa [#allocation3], 1 }
 0x1b7   :  { %915 = vsyncpa [#allocation3 + $0x1], 1 }

</bundles_post_ra>
